<compile_context>
chip_gen: v5e
topology: v5e:2x2
jax: 0.10.0
libtpu: 0.0.40
codegen_flags: <defaults>
</compile_context>

<pallas_src>
import numpy as np
import jax
import jax.numpy as jnp
from jax.experimental import pallas as pl
from jax.experimental.pallas import tpu as pltpu


# ----------------------------------------------------------------------------
# Kernel body
# ----------------------------------------------------------------------------
def time_embedding_kernel(t_ref, freqs_ref, w1c_ref, w1s_ref, b1_ref,
                          w2_ref, b2_ref, out_ref):
    # t_ref:     [bz, 1]        f32
    # freqs_ref: [1, half]      f32
    # w1c_ref:   [half, emb_ch] f32   (rows of W1^T multiplying cos(args))
    # w1s_ref:   [half, emb_ch] f32   (rows of W1^T multiplying sin(args))
    # b1_ref:    [1, emb_ch]    f32
    # w2_ref:    [emb_ch, tn]   bf16  (current N-tile of W2^T)
    # b2_ref:    [1, tn]        f32
    # out_ref:   [bz, tn]       f32
    args = t_ref[...] * freqs_ref[...]                        # [bz, half] (VPU)

    # Split matmul == concat([cos, sin], -1) @ W1^T : no XLU concat needed.
    cos_e = jnp.cos(args)
    sin_e = jnp.sin(args)
    h = (jnp.dot(cos_e, w1c_ref[...], preferred_element_type=jnp.float32)
         + jnp.dot(sin_e, w1s_ref[...], preferred_element_type=jnp.float32)
         + b1_ref[...])                                        # [bz, emb_ch] f32

    h = h * jax.nn.sigmoid(h)                                  # SiLU (EUP + VPU)

    out = (jnp.dot(h.astype(w2_ref.dtype), w2_ref[...],
                   preferred_element_type=jnp.float32)
           + b2_ref[...])                                      # [bz, tn] f32
    out_ref[...] = out.astype(out_ref.dtype)


# ----------------------------------------------------------------------------
# Generation-aware configuration helpers
# ----------------------------------------------------------------------------
def _tensorcores_per_chip():
    """2 on v7x (megacore grid sharding), 1 on v5e/v6e and as a safe default."""
    try:
        kind = jax.devices()[0].device_kind.lower()
    except Exception:
        return 1
    return 2 if "v7" in kind else 1


def _select_tiling(emb_ch, num_cores):
    """Return (grid_n, tile_n) for the W2 output-N dimension."""
    def valid_tn(g):
        if emb_ch % g:
            return None
        tn = emb_ch // g
        if tn != emb_ch and tn % 128:   # (8,128) lane constraint on blocks
            return None
        return tn

    def fits(g, tn, budget):
        bufs = 1 if g == 1 else 2       # W2 tile is double-buffered when streamed
        return bufs * emb_ch * tn * 2 <= budget   # bf16 bytes

    if num_cores >= 2:
        # v7x: even grid shards across both TCs; cap double-buffered W2 tile
        # at ~16 MiB (64 MiB total VMEM per TC).
        for g in range(num_cores, emb_ch + 1, num_cores):
            tn = valid_tn(g)
            if tn is not None and fits(g, tn, 16 << 20):
                return g, tn
        budget = 24 << 20               # fallback: smallest-step tiling that fits
    else:
        # v5e / v6e: single TC -> minimize grid steps; 128 MiB VMEM holds even
        # a 4K x 4K bf16 W2 in a single tile once vmem_limit_bytes is raised.
        budget = 48 << 20

    for g in range(1, emb_ch + 1):
        tn = valid_tn(g)
        if tn is not None and fits(g, tn, budget):
            return g, tn
    return 1, emb_ch


def _vmem_limit_bytes(bz, half, emb_ch, tn, grid_n, num_cores):
    """Explicit scoped-VMEM budget: actual block footprint + headroom."""
    f32, bf16 = 4, 2
    # Residents: worst case 2 buffers (in case the Buffered(1) path falls back).
    resident = 2 * ((bz * 1 + half + 2 * half * emb_ch + emb_ch) * f32)
    stream_bufs = 1 if grid_n == 1 else 2
    streamed = stream_bufs * (emb_ch * tn * bf16 + tn * f32)   # W2 + b2 tiles
    out_bytes = 2 * bz * tn * f32                              # output tile
    need = resident + streamed + out_bytes
    limit = int(need * 1.25) + (2 << 20)                       # compiler scratch
    cap = (48 << 20) if num_cores >= 2 else (100 << 20)        # respect v7x VMEM
    return max(min(limit, cap), 32 << 20)                      # never below default


def _make_specs(bz, half, emb_ch, tn, grid_n, buffered):
    """BlockSpecs; grid-invariant blocks get a single pipeline buffer."""
    def spec(shape, index_map, invariant):
        if buffered and invariant:
            return pl.BlockSpec(shape, index_map, pipeline_mode=pl.Buffered(1))
        return pl.BlockSpec(shape, index_map)

    const = lambda n: (0, 0)
    tile = lambda n: (0, n)
    w2_invariant = (grid_n == 1)
    in_specs = [
        spec((bz, 1), const, True),            # t
        spec((1, half), const, True),          # freqs
        spec((half, emb_ch), const, True),     # W1 cos rows
        spec((half, emb_ch), const, True),     # W1 sin rows
        spec((1, emb_ch), const, True),        # b1
        spec((emb_ch, tn), tile, w2_invariant),  # W2 N-tile
        spec((1, tn), tile, w2_invariant),       # b2 N-tile
    ]
    out_spec = pl.BlockSpec((bz, tn), tile)
    return in_specs, out_spec


# ----------------------------------------------------------------------------
# Public wrapper
# ----------------------------------------------------------------------------
def time_embedding_forward(t, freqs, w1, b1, w2, b2):
    """t: [bz] timesteps; w1: [in_ch, emb_ch]; w2: [emb_ch, emb_ch]
    (weights stored as [in, out], i.e. already W^T vs. torch.nn.Linear)."""
    bz = int(t.shape[0])
    emb_ch = int(w2.shape[1])
    half = int(freqs.shape[-1])

    # Pre-split W1 into cos / sin row blocks (replaces the in-kernel concat).
    # For odd in_channels the PyTorch zero-pad column multiplies row 2*half of
    # W1^T, contributing nothing, so dropping it is exact.
    # W1/b1 stay f32 for accuracy (negligible bytes); W2 -> bf16 halves the
    # dominant weight stream.
    w1c = w1[:half].astype(jnp.float32)
    w1s = w1[half:2 * half].astype(jnp.float32)
    w2b = w2.astype(jnp.bfloat16)

    t2 = t.reshape(bz, 1).astype(jnp.float32)
    freqs2 = freqs.reshape(1, half).astype(jnp.float32)
    b1v = b1.reshape(1, emb_ch).astype(jnp.float32)
    b2v = b2.reshape(1, emb_ch).astype(jnp.float32)

    num_cores = _tensorcores_per_chip()
    grid_n, tn = _select_tiling(emb_ch, num_cores)
    vmem_limit = _vmem_limit_bytes(bz, half, emb_ch, tn, grid_n, num_cores)

    cost = pl.CostEstimate(
        flops=2 * bz * (2 * half * emb_ch + emb_ch * emb_ch),
        transcendentals=2 * bz * half + bz * emb_ch,   # cos, sin, sigmoid
        bytes_accessed=(t2.size + freqs2.size + b1v.size + b2v.size
                        + w1c.size + w1s.size + bz * emb_ch) * 4
                       + w2b.size * 2,
    )

    def call(buffered):
        in_specs, out_spec = _make_specs(bz, half, emb_ch, tn, grid_n, buffered)
        return pl.pallas_call(
            time_embedding_kernel,
            out_shape=jax.ShapeDtypeStruct((bz, emb_ch), jnp.float32),
            grid=(grid_n,),
            in_specs=in_specs,
            out_specs=out_spec,
            compiler_params=pltpu.CompilerParams(
                dimension_semantics=("parallel",),
                vmem_limit_bytes=vmem_limit),
            cost_estimate=cost,
        )(t2, freqs2, w1c, w1s, b1v, w2b, b2v)

    try:
        return call(buffered=True)
    except Exception:
        # Older jax versions may reject pipeline_mode=pl.Buffered(1); kernel is
        # identical, just with default double-buffered resident blocks.
        return call(buffered=False)


# ----------------------------------------------------------------------------
# Parameter / reference helpers
# ----------------------------------------------------------------------------
def make_params(key, in_channels, embedding_channels):
    """torch.nn.Linear default init U(-1/sqrt(fan_in), 1/sqrt(fan_in));
    weights stored as [in, out] (= W^T)."""
    k1, k2, k3, k4 = jax.random.split(key, 4)
    s1 = 1.0 / np.sqrt(in_channels)
    s2 = 1.0 / np.sqrt(embedding_channels)
    w1 = jax.random.uniform(k1, (in_channels, embedding_channels), jnp.float32, -s1, s1)
    b1 = jax.random.uniform(k2, (embedding_channels,), jnp.float32, -s1, s1)
    w2 = jax.random.uniform(k3, (embedding_channels, embedding_channels), jnp.float32, -s2, s2)
    b2 = jax.random.uniform(k4, (embedding_channels,), jnp.float32, -s2, s2)
    return w1, b1, w2, b2


def make_freqs(in_channels, max_period=10000):
    half = in_channels // 2
    freqs = np.exp(-np.log(max_period) * np.arange(half, dtype=np.float32) / half)
    return jnp.asarray(freqs, dtype=jnp.float32).reshape(1, half)


def reference_forward(t, freqs, w1, b1, w2, b2):
    """Pure-JAX f32 reference of the PyTorch module (exact semantics,
    including the zero-pad column for odd in_channels)."""
    in_ch = w1.shape[0]
    args = t.astype(jnp.float32)[:, None] * freqs.reshape(1, -1)
    emb = jnp.concatenate([jnp.cos(args), jnp.sin(args)], axis=-1)
    if emb.shape[-1] < in_ch:
        pad = jnp.zeros((emb.shape[0], in_ch - emb.shape[-1]), emb.dtype)
        emb = jnp.concatenate([emb, pad], axis=-1)
    h = emb @ w1 + b1[None, :]
    h = h * jax.nn.sigmoid(h)
    return h @ w2 + b2[None, :]


if __name__ == "__main__":
    # Small shapes consistent with the module (in_channels even -> the odd-dim
    # zero-pad branch is a no-op; the split-matmul formulation handles an odd
    # dim exactly as well).
    bz = 8
    in_channels = 64          # sinusoidal embedding dim
    embedding_channels = 128  # MLP hidden/output dim

    key = jax.random.PRNGKey(0)
    kt, kp = jax.random.split(key)
    t = jax.random.uniform(kt, (bz,), jnp.float32, 0.0, 1000.0)  # timesteps
    freqs = make_freqs(in_channels)
    w1, b1, w2, b2 = make_params(kp, in_channels, embedding_channels)

    out = time_embedding_forward(t, freqs, w1, b1, w2, b2)
    out = jax.block_until_ready(out)

    ref = reference_forward(t, freqs, w1, b1, w2, b2)
    # W1/first matmul are f32; only W2 (and the h feeding it) are bf16, so the
    # tolerance is tighter than the previous all-bf16 version.
    np.testing.assert_allclose(np.asarray(out), np.asarray(ref), rtol=3e-2, atol=3e-2)

    print("KERNEL_OK")
</pallas_src>

<mosaic_0001>
module attributes {stable_mosaic.version = 11 : i64} {
  func.func @time_embedding_kernel(%arg0: i32, %arg1: memref<8x1xf32, #tpu.memory_space<vmem>>, %arg2: memref<1x32xf32, #tpu.memory_space<vmem>>, %arg3: memref<32x128xf32, #tpu.memory_space<vmem>>, %arg4: memref<32x128xf32, #tpu.memory_space<vmem>>, %arg5: memref<1x128xf32, #tpu.memory_space<vmem>>, %arg6: memref<128x128xbf16, #tpu.memory_space<vmem>>, %arg7: memref<1x128xf32, #tpu.memory_space<vmem>>, %arg8: memref<8x128xf32, #tpu.memory_space<vmem>>) attributes {dimension_semantics = [#tpu.dimension_semantics<parallel>], iteration_bounds = array<i64: 1>, scalar_prefetch = 0 : i64, scratch_operands = 0 : i64, tpu.core_type = #tpu.core_type<tc>, window_params = [{pipeline_mode = #tpu.pipeline_mode<synchronous>, transform_indices = @transform_0, window_bounds = array<i64: 8, 1>}, {pipeline_mode = #tpu.pipeline_mode<synchronous>, transform_indices = @transform_1, window_bounds = array<i64: 1, 32>}, {pipeline_mode = #tpu.pipeline_mode<synchronous>, transform_indices = @transform_2, window_bounds = array<i64: 32, 128>}, {pipeline_mode = #tpu.pipeline_mode<synchronous>, transform_indices = @transform_3, window_bounds = array<i64: 32, 128>}, {pipeline_mode = #tpu.pipeline_mode<synchronous>, transform_indices = @transform_4, window_bounds = array<i64: 1, 128>}, {pipeline_mode = #tpu.pipeline_mode<synchronous>, transform_indices = @transform_5, window_bounds = array<i64: 128, 128>}, {pipeline_mode = #tpu.pipeline_mode<synchronous>, transform_indices = @transform_6, window_bounds = array<i64: 1, 128>}, {transform_indices = @transform_7, window_bounds = array<i64: 8, 128>}]} {
    %c0 = arith.constant 0 : index
    %c0_0 = arith.constant 0 : index
    %0 = vector.load %arg1[%c0, %c0_0] : memref<8x1xf32, #tpu.memory_space<vmem>>, vector<8x1xf32>
    %c0_1 = arith.constant 0 : index
    %c0_2 = arith.constant 0 : index
    %1 = vector.load %arg2[%c0_1, %c0_2] : memref<1x32xf32, #tpu.memory_space<vmem>>, vector<1x32xf32>
    %2 = vector.broadcast %0 : vector<8x1xf32> to vector<8x32xf32>
    %3 = vector.broadcast %1 : vector<1x32xf32> to vector<8x32xf32>
    %4 = arith.mulf %2, %3 : vector<8x32xf32>
    %5 = math.cos %4 : vector<8x32xf32>
    %6 = math.sin %4 : vector<8x32xf32>
    %c0_3 = arith.constant 0 : index
    %c0_4 = arith.constant 0 : index
    %7 = vector.load %arg3[%c0_3, %c0_4] : memref<32x128xf32, #tpu.memory_space<vmem>>, vector<32x128xf32>
    %cst = arith.constant dense<0.000000e+00> : vector<8x128xf32>
    %8 = tpu.matmul %5, %7, %cst {dimension_numbers = #tpu.dot_dimension_numbers<[1], [0], [0], [1], [0, 0, 1, 1], [], []>} : vector<8x32xf32>, vector<32x128xf32>, vector<8x128xf32> -> vector<8x128xf32>
    %c0_5 = arith.constant 0 : index
    %c0_6 = arith.constant 0 : index
    %9 = vector.load %arg4[%c0_5, %c0_6] : memref<32x128xf32, #tpu.memory_space<vmem>>, vector<32x128xf32>
    %cst_7 = arith.constant dense<0.000000e+00> : vector<8x128xf32>
    %10 = tpu.matmul %6, %9, %cst_7 {dimension_numbers = #tpu.dot_dimension_numbers<[1], [0], [0], [1], [0, 0, 1, 1], [], []>} : vector<8x32xf32>, vector<32x128xf32>, vector<8x128xf32> -> vector<8x128xf32>
    %11 = arith.addf %8, %10 : vector<8x128xf32>
    %c0_8 = arith.constant 0 : index
    %c0_9 = arith.constant 0 : index
    %12 = vector.load %arg5[%c0_8, %c0_9] : memref<1x128xf32, #tpu.memory_space<vmem>>, vector<1x128xf32>
    %13 = vector.broadcast %12 : vector<1x128xf32> to vector<8x128xf32>
    %14 = arith.addf %11, %13 : vector<8x128xf32>
    %15 = arith.negf %14 : vector<8x128xf32>
    %16 = math.exp %15 : vector<8x128xf32>
    %cst_10 = arith.constant 1.000000e+00 : f32
    %17 = vector.broadcast %cst_10 : f32 to vector<8x128xf32>
    %18 = arith.addf %17, %16 : vector<8x128xf32>
    %19 = arith.divf %17, %18 : vector<8x128xf32>
    %20 = arith.mulf %14, %19 : vector<8x128xf32>
    %21 = arith.truncf %20 : vector<8x128xf32> to vector<8x128xbf16>
    %c0_11 = arith.constant 0 : index
    %c0_12 = arith.constant 0 : index
    %22 = vector.load %arg6[%c0_11, %c0_12] : memref<128x128xbf16, #tpu.memory_space<vmem>>, vector<128x128xbf16>
    %cst_13 = arith.constant dense<0.000000e+00> : vector<8x128xf32>
    %23 = tpu.matmul %21, %22, %cst_13 {dimension_numbers = #tpu.dot_dimension_numbers<[1], [0], [0], [1], [0, 0, 1, 1], [], []>} : vector<8x128xbf16>, vector<128x128xbf16>, vector<8x128xf32> -> vector<8x128xf32>
    %c0_14 = arith.constant 0 : index
    %c0_15 = arith.constant 0 : index
    %24 = vector.load %arg7[%c0_14, %c0_15] : memref<1x128xf32, #tpu.memory_space<vmem>>, vector<1x128xf32>
    %25 = vector.broadcast %24 : vector<1x128xf32> to vector<8x128xf32>
    %26 = arith.addf %23, %25 : vector<8x128xf32>
    %c0_16 = arith.constant 0 : index
    %c0_17 = arith.constant 0 : index
    %27 = vector.load %arg8[%c0_16, %c0_17] : memref<8x128xf32, #tpu.memory_space<vmem>>, vector<8x128xf32>
    tpu.vector_store %arg8[%c0_16, %c0_17], %26 {strides = array<i32>} : memref<8x128xf32, #tpu.memory_space<vmem>>, vector<8x128xf32>,
    return
  }
  func.func @transform_0(%arg0: i32) -> (i32, i32) {
    %c0_i32 = arith.constant 0 : i32
    %c0_i32_0 = arith.constant 0 : i32
    %c0_i32_1 = arith.constant 0 : i32
    return %c0_i32, %c0_i32_0 : i32, i32
  }
  func.func @transform_1(%arg0: i32) -> (i32, i32) {
    %c0_i32 = arith.constant 0 : i32
    %c0_i32_0 = arith.constant 0 : i32
    %c0_i32_1 = arith.constant 0 : i32
    return %c0_i32, %c0_i32_0 : i32, i32
  }
  func.func @transform_2(%arg0: i32) -> (i32, i32) {
    %c0_i32 = arith.constant 0 : i32
    %c0_i32_0 = arith.constant 0 : i32
    %c0_i32_1 = arith.constant 0 : i32
    return %c0_i32, %c0_i32_0 : i32, i32
  }
  func.func @transform_3(%arg0: i32) -> (i32, i32) {
    %c0_i32 = arith.constant 0 : i32
    %c0_i32_0 = arith.constant 0 : i32
    %c0_i32_1 = arith.constant 0 : i32
    return %c0_i32, %c0_i32_0 : i32, i32
  }
  func.func @transform_4(%arg0: i32) -> (i32, i32) {
    %c0_i32 = arith.constant 0 : i32
    %c0_i32_0 = arith.constant 0 : i32
    %c0_i32_1 = arith.constant 0 : i32
    return %c0_i32, %c0_i32_0 : i32, i32
  }
  func.func @transform_5(%arg0: i32) -> (i32, i32) {
    %c0_i32 = arith.constant 0 : i32
    %c0_i32_0 = arith.constant 0 : i32
    return %c0_i32, %arg0 : i32, i32
  }
  func.func @transform_6(%arg0: i32) -> (i32, i32) {
    %c0_i32 = arith.constant 0 : i32
    %c0_i32_0 = arith.constant 0 : i32
    return %c0_i32, %arg0 : i32, i32
  }
  func.func @transform_7(%arg0: i32) -> (i32, i32) {
    %c0_i32 = arith.constant 0 : i32
    %c0_i32_0 = arith.constant 0 : i32
    return %c0_i32, %arg0 : i32, i32
  }
}

module attributes {stable_mosaic.version = 11 : i64} {
  func.func @time_embedding_kernel(%arg0: i32, %arg1: memref<8x1xf32, #tpu.memory_space<vmem>>, %arg2: memref<1x32xf32, #tpu.memory_space<vmem>>, %arg3: memref<32x128xf32, #tpu.memory_space<vmem>>, %arg4: memref<32x128xf32, #tpu.memory_space<vmem>>, %arg5: memref<1x128xf32, #tpu.memory_space<vmem>>, %arg6: memref<128x128xbf16, #tpu.memory_space<vmem>>, %arg7: memref<1x128xf32, #tpu.memory_space<vmem>>, %arg8: memref<8x128xf32, #tpu.memory_space<vmem>>) attributes {dimension_semantics = [#tpu.dimension_semantics<parallel>], iteration_bounds = array<i64: 1>, scalar_prefetch = 0 : i64, scratch_operands = 0 : i64, tpu.core_type = #tpu.core_type<tc>, window_params = [{pipeline_mode = #tpu.pipeline_mode<synchronous>, transform_indices = @transform_0, window_bounds = array<i64: 8, 1>}, {pipeline_mode = #tpu.pipeline_mode<synchronous>, transform_indices = @transform_1, window_bounds = array<i64: 1, 32>}, {pipeline_mode = #tpu.pipeline_mode<synchronous>, transform_indices = @transform_2, window_bounds = array<i64: 32, 128>}, {pipeline_mode = #tpu.pipeline_mode<synchronous>, transform_indices = @transform_3, window_bounds = array<i64: 32, 128>}, {pipeline_mode = #tpu.pipeline_mode<synchronous>, transform_indices = @transform_4, window_bounds = array<i64: 1, 128>}, {transform_indices = @transform_5, window_bounds = array<i64: 128, 128>}, {transform_indices = @transform_6, window_bounds = array<i64: 1, 128>}, {transform_indices = @transform_7, window_bounds = array<i64: 8, 128>}]} {
    %c0 = arith.constant 0 : index
    %c0_0 = arith.constant 0 : index
    %0 = vector.load %arg1[%c0, %c0_0] : memref<8x1xf32, #tpu.memory_space<vmem>>, vector<8x1xf32>
    %c0_1 = arith.constant 0 : index
    %c0_2 = arith.constant 0 : index
    %1 = vector.load %arg2[%c0_1, %c0_2] : memref<1x32xf32, #tpu.memory_space<vmem>>, vector<1x32xf32>
    %2 = vector.broadcast %0 : vector<8x1xf32> to vector<8x32xf32>
    %3 = vector.broadcast %1 : vector<1x32xf32> to vector<8x32xf32>
    %4 = arith.mulf %2, %3 : vector<8x32xf32>
    %5 = math.cos %4 : vector<8x32xf32>
    %6 = math.sin %4 : vector<8x32xf32>
    %c0_3 = arith.constant 0 : index
    %c0_4 = arith.constant 0 : index
    %7 = vector.load %arg3[%c0_3, %c0_4] : memref<32x128xf32, #tpu.memory_space<vmem>>, vector<32x128xf32>
    %cst = arith.constant dense<0.000000e+00> : vector<8x128xf32>
    %8 = tpu.matmul %5, %7, %cst {dimension_numbers = #tpu.dot_dimension_numbers<[1], [0], [0], [1], [0, 0, 1, 1], [], []>} : vector<8x32xf32>, vector<32x128xf32>, vector<8x128xf32> -> vector<8x128xf32>
    %c0_5 = arith.constant 0 : index
    %c0_6 = arith.constant 0 : index
    %9 = vector.load %arg4[%c0_5, %c0_6] : memref<32x128xf32, #tpu.memory_space<vmem>>, vector<32x128xf32>
    %cst_7 = arith.constant dense<0.000000e+00> : vector<8x128xf32>
    %10 = tpu.matmul %6, %9, %cst_7 {dimension_numbers = #tpu.dot_dimension_numbers<[1], [0], [0], [1], [0, 0, 1, 1], [], []>} : vector<8x32xf32>, vector<32x128xf32>, vector<8x128xf32> -> vector<8x128xf32>
    %11 = arith.addf %8, %10 : vector<8x128xf32>
    %c0_8 = arith.constant 0 : index
    %c0_9 = arith.constant 0 : index
    %12 = vector.load %arg5[%c0_8, %c0_9] : memref<1x128xf32, #tpu.memory_space<vmem>>, vector<1x128xf32>
    %13 = vector.broadcast %12 : vector<1x128xf32> to vector<8x128xf32>
    %14 = arith.addf %11, %13 : vector<8x128xf32>
    %15 = arith.negf %14 : vector<8x128xf32>
    %16 = math.exp %15 : vector<8x128xf32>
    %cst_10 = arith.constant 1.000000e+00 : f32
    %17 = vector.broadcast %cst_10 : f32 to vector<8x128xf32>
    %18 = arith.addf %17, %16 : vector<8x128xf32>
    %19 = arith.divf %17, %18 : vector<8x128xf32>
    %20 = arith.mulf %14, %19 : vector<8x128xf32>
    %21 = arith.truncf %20 : vector<8x128xf32> to vector<8x128xbf16>
    %c0_11 = arith.constant 0 : index
    %c0_12 = arith.constant 0 : index
    %22 = vector.load %arg6[%c0_11, %c0_12] : memref<128x128xbf16, #tpu.memory_space<vmem>>, vector<128x128xbf16>
    %cst_13 = arith.constant dense<0.000000e+00> : vector<8x128xf32>
    %23 = tpu.matmul %21, %22, %cst_13 {dimension_numbers = #tpu.dot_dimension_numbers<[1], [0], [0], [1], [0, 0, 1, 1], [], []>} : vector<8x128xbf16>, vector<128x128xbf16>, vector<8x128xf32> -> vector<8x128xf32>
    %c0_14 = arith.constant 0 : index
    %c0_15 = arith.constant 0 : index
    %24 = vector.load %arg7[%c0_14, %c0_15] : memref<1x128xf32, #tpu.memory_space<vmem>>, vector<1x128xf32>
    %25 = vector.broadcast %24 : vector<1x128xf32> to vector<8x128xf32>
    %26 = arith.addf %23, %25 : vector<8x128xf32>
    %c0_16 = arith.constant 0 : index
    %c0_17 = arith.constant 0 : index
    %27 = vector.load %arg8[%c0_16, %c0_17] : memref<8x128xf32, #tpu.memory_space<vmem>>, vector<8x128xf32>
    tpu.vector_store %arg8[%c0_16, %c0_17], %26 {strides = array<i32>} : memref<8x128xf32, #tpu.memory_space<vmem>>, vector<8x128xf32>,
    return
  }
  func.func @transform_0(%arg0: i32) -> (i32, i32) {
    %c0_i32 = arith.constant 0 : i32
    %c0_i32_0 = arith.constant 0 : i32
    %c0_i32_1 = arith.constant 0 : i32
    return %c0_i32, %c0_i32_0 : i32, i32
  }
  func.func @transform_1(%arg0: i32) -> (i32, i32) {
    %c0_i32 = arith.constant 0 : i32
    %c0_i32_0 = arith.constant 0 : i32
    %c0_i32_1 = arith.constant 0 : i32
    return %c0_i32, %c0_i32_0 : i32, i32
  }
  func.func @transform_2(%arg0: i32) -> (i32, i32) {
    %c0_i32 = arith.constant 0 : i32
    %c0_i32_0 = arith.constant 0 : i32
    %c0_i32_1 = arith.constant 0 : i32
    return %c0_i32, %c0_i32_0 : i32, i32
  }
  func.func @transform_3(%arg0: i32) -> (i32, i32) {
    %c0_i32 = arith.constant 0 : i32
    %c0_i32_0 = arith.constant 0 : i32
    %c0_i32_1 = arith.constant 0 : i32
    return %c0_i32, %c0_i32_0 : i32, i32
  }
  func.func @transform_4(%arg0: i32) -> (i32, i32) {
    %c0_i32 = arith.constant 0 : i32
    %c0_i32_0 = arith.constant 0 : i32
    %c0_i32_1 = arith.constant 0 : i32
    return %c0_i32, %c0_i32_0 : i32, i32
  }
  func.func @transform_5(%arg0: i32) -> (i32, i32) {
    %c0_i32 = arith.constant 0 : i32
    %c0_i32_0 = arith.constant 0 : i32
    return %c0_i32, %arg0 : i32, i32
  }
  func.func @transform_6(%arg0: i32) -> (i32, i32) {
    %c0_i32 = arith.constant 0 : i32
    %c0_i32_0 = arith.constant 0 : i32
    return %c0_i32, %arg0 : i32, i32
  }
  func.func @transform_7(%arg0: i32) -> (i32, i32) {
    %c0_i32 = arith.constant 0 : i32
    %c0_i32_0 = arith.constant 0 : i32
    return %c0_i32, %arg0 : i32, i32
  }
}

</mosaic_0001>

<bundles_post_ra>
// kernel: tpu_custom_call.1
= control target key start
LH: loop header
LB: loop body
LE: loop exit
PB: predicated region body
PF: predicated region fallthrough
CT: control target
= control target key end

     0   :  { %12 = vsyncpa [#allocation3], 0  ;;  %s889_s0 = inlined_call_operand.vmem [shape: f32[8,1], index: 0, kind: input, shape index: {}]   ;;  %s890_s1 = inlined_call_operand.vmem [shape: f32[1,32], index: 1, kind: input, shape index: {}]   ;;  %s891_s2 = inlined_call_operand.hbm [shape: f32[32,128], index: 2, kind: input, shape index: {}]   ;;  %s892_s3 = inlined_call_operand.hbm [shape: f32[32,128], index: 3, kind: input, shape index: {}]   ;;  %s893_s4 = inlined_call_operand.vmem [shape: f32[1,128], index: 4, kind: input, shape index: {}]   ;;  %s894_s5 = inlined_call_operand.hbm [shape: bf16[128,128], index: 5, kind: input, shape index: {}]   ;;  %s895_s6 = inlined_call_operand.vmem [shape: f32[1,128], index: 6, kind: input, shape index: {}]   ;;  %s896_s7 = inlined_call_operand.hbm [shape: f32[8,128], index: 7, kind: output, shape index: {}]  }
   0x1   :  { %13 = vsyncpa [#allocation6], 0 }
   0x2   :  { %14 = vsyncpa [#allocation4], 0  ;;  %s36_s26 = sshll.u32 %s892_s3, 4  ;;  %s749_s27 = smov [#allocation5]   ;;  %s37_s26 = int_to_ptr.hbm [resolvable:$true] %s36_s26 }
   0x3   :  { %s38_s28 = sshll.u32 %s749_s27, 4  ;;  %s23_s8 = sshll.u32 %s891_s2, 4  ;;  %s39_s28 = int_to_ptr.vmem [resolvable:$true] %s38_s28  ;;  %s24_s8 = int_to_ptr.hbm [resolvable:$true] %s23_s8 }
   0x4   :  { %s750_s9 = smov 128   ;;  %s751_s10 = smov 8  }
   0x5   :  { %44 = dma.hbm_to_vmem [thread:$0]  %s37_s26, 512, %s39_s28, [#allocation6], %s750_s9, %s750_s9, %s751_s10  }
   0x6   :  { %s752_s11 = smov [#allocation2]   ;;  %s51_s15 = sshll.u32 %s894_s5, 4  ;;  %s52_s15 = int_to_ptr.hbm [resolvable:$true] %s51_s15 }
   0x7   :  { %s25_s12 = sshll.u32 %s752_s11, 4  ;;  %s753_s3 = smov [#allocation7]   ;;  %s26_s12 = int_to_ptr.vmem [resolvable:$true] %s25_s12 }
   0x8   :  { %31 = dma.hbm_to_vmem [thread:$0]  %s24_s8, 512, %s26_s12, [#allocation3], %s750_s9, %s750_s9, %s751_s10  }
   0x9   :  { %s53_s16 = sshll.u32 %s753_s3, 4  ;;  %s754_s17 = smov 64   ;;  %s54_s16 = int_to_ptr.vmem [resolvable:$true] %s53_s16 }
   0xa   :  { %s755_s18 = smov 4  }
   0xb   :  { %59 = dma.hbm_to_vmem [thread:$0]  %s52_s15, 1024, %s54_s16, [#allocation6], %s754_s17, %s754_s17, %s755_s18  }
   0xc   :  { %743 = dma.done.wait [#allocation3], 512  }
   0xd   :  { %744 = vsyncadd [#allocation3], 4294966784 }
   0xe   :  { %745 = dma.done.wait [#allocation6], 1536  }
   0xf   :  { %746 = vsyncadd [#allocation6], 4294965760  ;;  %v756_v0 = vmov 0   ;;  %v74_v1 = vld [vmem:[%s889_s0] sm:$0xff]  ;;  %v401_v3 = vld [vmem:[#allocation5 + $0x18] sm:$0xff]  ;;  %s763_s22 = smov [#allocation8]  }
  0x10   :  { %639 = vset.pattern.permute.xlu0 %v756_v0  ;;  %v640_v2 = vld [vmem:[%s890_s1] ss:$0 sm:$0xff]  ;;  %v397_v4 = vld [vmem:[#allocation2 + $0x18] sm:$0xff]  ;;  %v400_v5 = vld [vmem:[#allocation5 + $0x10] sm:$0xff]  ;;  %418 = vmatpush.msra.mxu0 %v401_v3  ;;  %v757_v24 = vmov 683565275  }
  0x11   :  { %78 = vperm.xlu0 %639, %v74_v1   ;;  %441 = vmatpush.msra.mxu1 %v397_v4  ;;  %v396_v7 = vld [vmem:[#allocation2 + $0x10] sm:$0xff]  ;;  %v399_v9 = vld [vmem:[#allocation5 + $0x8] sm:$0xff]  ;;  %v398_v12 = vld [vmem:[#allocation5] sm:$0xff]  ;;  %v758_v26 = vmov 2475754826   ;;  %s562_s23 = sshll.u32 %s763_s22, 4  ;;  %s563_s23 = int_to_ptr.vmem [resolvable:$true] %s562_s23 }
  0x12   :  { %v395_v10 = vld [vmem:[#allocation2 + $0x8] sm:$0xff]  ;;  %419 = vmatpush.msra.mxu0 %v400_v5  ;;  %v394_v13 = vld [vmem:[#allocation2] sm:$0xff]  ;;  %v759_v29 = vmov 2131351028   ;;  %v760_v32 = vmov 2102212464  }
  0x13   :  { %442 = vmatpush.msra.mxu1 %v396_v7  ;;  %v761_v35 = vmov 920167782   ;;  %v762_v38 = vmov 1326507024   ;;  %s564_s26 = sshll.u32 %s896_s7, 4  ;;  %s565_s26 = int_to_ptr.hbm [resolvable:$true] %s564_s26 }
  0x14   :  { %420 = vmatpush.msra.mxu0 %v399_v9 }
  0x15   :  { %443 = vmatpush.msra.mxu1 %v395_v10 }
  0x16   :  { %421 = vmatpush.msra.mxu0 %v398_v12 }
  0x17   :  { %444 = vmatpush.msra.mxu1 %v394_v13 }
  0x83   :  { %v79_v6 = vpop.permute.xlu0 %78 }
  0x84   :  { %v820_v8 = vmul.f32 %v640_v2, %v79_v6 }
  0x86   :  { %v88_v11 = vand.u32 2139095040, %v820_v8  ;;  %v85_v16 = vand.u32 2147483647, %v820_v8  ;;  %vm87_vm12 = vcmp.lt.s32.totalorder %v820_v8, 0 }
  0x88   :  { %v89_v14 = vshrl.u32 %v88_v11, 23  ;;  %v92_v18 = vand.u32 8388607, %v85_v16  ;;  %vm86_vm13 = vcmp.le.f32.partialorder %v85_v16, 0.7853982 }
  0x8a   :  { %v575_v15 = vadd.s32 4294967169, %v89_v14  ;;  %v93_v22 = vor.u32 8388608, %v92_v18 }
  0x8c   :  { %v95_v17 = vadd.s32 1, %v575_v15  ;;  %v837_v45 = vshll.u32 %v93_v22, 8 }
  0x8e   :  { %vm96_vm0 = vcmp.gt.s32.totalorder %v95_v17, 0  ;;  %v134_v54 = vand.u32 65535, %v837_v45  ;;  %v135_v59 = vshrl.u32 %v837_v45, 16 }
  0x8f   :  { %v97_v19 = vsel %vm96_vm0, %v95_v17, 0 }
  0x90   :  { %v99_v20 = vand.u32 31, %v97_v19  ;;  %v828_v23 = vshrl.u32 %v97_v19, 5 }
  0x92   :  { %v826_v21 = vsub.s32 32, %v99_v20  ;;  %v102_v25 = vshll.u32 %v757_v24, %v99_v20  ;;  %v105_v27 = vshll.u32 %v758_v26, %v99_v20  ;;  %v108_v31 = vshll.u32 %v759_v29, %v99_v20 }
  0x93   :  { %v111_v34 = vshll.u32 %v760_v32, %v99_v20  ;;  %v114_v37 = vshll.u32 %v761_v35, %v99_v20  ;;  %vm117_vm1 = vcmp.lt.s32.totalorder %v828_v23, 1  ;;  %vm120_vm2 = vcmp.lt.s32.totalorder %v828_v23, 4 }
  0x94   :  { %v103_v28 = vshrl.u32 %v758_v26, %v826_v21  ;;  %v106_v30 = vshrl.u32 %v759_v29, %v826_v21  ;;  %v109_v33 = vshrl.u32 %v760_v32, %v826_v21  ;;  %v112_v36 = vshrl.u32 %v761_v35, %v826_v21 }
  0x95   :  { %v115_v39 = vshrl.u32 %v762_v38, %v826_v21  ;;  %vm119_vm3 = vcmp.lt.s32.totalorder %v828_v23, 3  ;;  %vm118_vm4 = vcmp.lt.s32.totalorder %v828_v23, 2  ;;  %v101_v18 = vshrl.u32 %v757_v24, %v826_v21 }
  0x96   :  { %v104_v40 = vor.u32 %v103_v28, %v102_v25  ;;  %v107_v41 = vor.u32 %v106_v30, %v105_v27  ;;  %v110_v42 = vor.u32 %v109_v33, %v108_v31  ;;  %v113_v43 = vor.u32 %v112_v36, %v111_v34 }
  0x97   :  { %v116_v44 = vor.u32 %v115_v39, %v114_v37 }
  0x98   :  { %v125_v46 = vsel %vm117_vm1, %v104_v40, %v107_v41  ;;  %v129_v47 = vsel %vm117_vm1, %v107_v41, %v110_v42  ;;  %v126_v48 = vsel %vm120_vm2, %v113_v43, 920167782  ;;  %v122_v12 = vsel %vm120_vm2, %v110_v42, 2102212464 }
  0x99   :  { %v130_v49 = vsel %vm120_vm2, %v116_v44, 1326507024  ;;  %v127_v50 = vsel %vm119_vm3, %v110_v42, %v126_v48  ;;  %v121_v28 = vsel %vm117_vm1, %v101_v18, %v104_v40  ;;  %v123_v29 = vsel %vm119_vm3, %v107_v41, %v122_v12 }
  0x9a   :  { %v131_v51 = vsel %vm119_vm3, %v113_v43, %v130_v49  ;;  %v128_v52 = vsel %vm118_vm4, %v125_v46, %v127_v50  ;;  %v124_v21 = vsel %vm118_vm4, %v121_v28, %v123_v29 }
  0x9b   :  { %v132_v53 = vsel %vm118_vm4, %v129_v47, %v131_v51  ;;  %v158_v57 = vand.u32 65535, %v128_v52  ;;  %v159_v58 = vshrl.u32 %v128_v52, 16  ;;  %v178_v36 = vmul.u32 %v837_v45, %v124_v21  ;;  %v622_v21 = vld [vmem:[#allocation7 + $0x30] sm:$0xff] }
  0x9c   :  { %v136_v55 = vand.u32 65535, %v132_v53  ;;  %v137_v56 = vshrl.u32 %v132_v53, 16  ;;  %vm402_vm4 = vcmask 261120  }
  0x9d   :  { %v161_v61 = vmul.u32 %v159_v58, %v134_v54  ;;  %v162_v63 = vmul.u32 %v158_v57, %v135_v59  ;;  %v160_v3 = vmul.u32 %v158_v57, %v134_v54  ;;  %v163_v6 = vmul.u32 %v159_v58, %v135_v59 }
  0x9e   :  { %v139_v60 = vmul.u32 %v137_v56, %v134_v54  ;;  %v140_v62 = vmul.u32 %v136_v55, %v135_v59  ;;  %v138_v1 = vmul.u32 %v136_v55, %v134_v54  ;;  %v141_v5 = vmul.u32 %v137_v56, %v135_v59 }
  0x9f   :  { %v164_v4 = vshll.u32 %v161_v61, 16  ;;  %v166_v9 = vshll.u32 %v162_v63, 16  ;;  %v165_v26 = vshrl.u32 %v161_v61, 16  ;;  %v167_v32 = vshrl.u32 %v162_v63, 16 }
  0xa0   :  { %v142_v2 = vshll.u32 %v139_v60, 16  ;;  %v144_v7 = vshll.u32 %v140_v62, 16  ;;  %v143_v22 = vshrl.u32 %v139_v60, 16  ;;  %v145_v30 = vshrl.u32 %v140_v62, 16 }
  0xa1   :  { %vm168_vm6 = vc.u32 %v160_v3, %v164_v4  ;;  %v170_v11 = vadd.s32 %v164_v4, %v160_v3 }
  0xa2   :  { %vm146_vm5 = vc.u32 %v138_v1, %v142_v2  ;;  %v148_v10 = vadd.s32 %v142_v2, %v138_v1  ;;  %v169_v14 = vsel %vm168_vm6, 1, %v756_v0 }
  0xa3   :  { %v147_v13 = vsel %vm146_vm5, 1, %v756_v0  ;;  %v171_v17 = vadd.s32 %v169_v14, %v163_v6  ;;  %vm172_vm8 = vc.u32 %v170_v11, %v166_v9  ;;  %v174_v34 = vadd.s32 %v170_v11, %v166_v9 }
  0xa4   :  { %v149_v15 = vadd.s32 %v147_v13, %v141_v5  ;;  %vm150_vm7 = vc.u32 %v148_v10, %v144_v7  ;;  %v173_v20 = vsel %vm172_vm8, 1, %v756_v0  ;;  %vm228_vm5 = vweird.f32 %v820_v8 }
  0xa5   :  { %v151_v19 = vsel %vm150_vm7, 1, %v756_v0  ;;  %v175_v27 = vadd.s32 %v173_v20, %v171_v17 }
  0xa6   :  { %v153_v25 = vadd.s32 %v151_v19, %v149_v15 }
  0xa7   :  { %v176_v33 = vadd.s32 %v175_v27, %v165_v26 }
  0xa8   :  { %v154_v31 = vadd.s32 %v153_v25, %v143_v22 }
  0xa9   :  { %v177_v0 = vadd.s32 %v176_v33, %v167_v32  ;;  %v623_v33 = vld [vmem:[#allocation7 + $0x38] sm:$0xff] }
  0xaa   :  { %v155_v24 = vadd.s32 %v154_v31, %v145_v30  ;;  %543 = vmatpush.bf16.msra.mxu2 %v623_v33 }
  0xab   :  { %v181_v35 = vadd.s32 1, %v177_v0 }
  0xac   :  { %vm180_vm9 = vc.u32 %v155_v24, %v174_v34  ;;  %v179_v48 = vadd.s32 %v174_v34, %v155_v24  ;;  %v621_v24 = vld [vmem:[#allocation7 + $0x28] sm:$0xff]  ;;  %v620_v34 = vld [vmem:[#allocation7 + $0x20] sm:$0xff] }
  0xad   :  { %v182_v37 = vsel %vm180_vm9, %v181_v35, %v177_v0  ;;  %v619_v0 = vld [vmem:[#allocation7 + $0x18] sm:$0xff]  ;;  %v618_v35 = vld [vmem:[#allocation7 + $0x10] sm:$0xff] }
  0xae   :  { %v183_v38 = vadd.s32 %v182_v37, %v178_v36  ;;  %544 = vmatpush.bf16.msra.mxu2 %v622_v21  ;;  %v617_v36 = vld [vmem:[#allocation7 + $0x8] sm:$0xff] }
  0xb0   :  { %v184_v39 = vadd.s32 536870912, %v183_v38 }
  0xb2   :  { %v185_v40 = vshrl.u32 %v184_v39, 30  ;;  %545 = vmatpush.bf16.msra.mxu2 %v621_v24  ;;  %v616_v39 = vld [vmem:[#allocation7] sm:$0xff] }
  0xb4   :  { %v186_v42 = vshll.u32 %v185_v40, 30  ;;  %v209_v61 = vsub.s32 4, %v185_v40 }
  0xb6   :  { %v187_v41 = vsub.s32 %v183_v38, %v186_v42  ;;  %v210_v3 = vsel %vm87_vm12, %v209_v61, %v185_v40  ;;  %546 = vmatpush.bf16.msra.mxu2 %v620_v34 }
  0xb7   :  { %v212_v6 = vsel %vm86_vm13, 0, %v210_v3 }
  0xb8   :  { %vm188_vm10 = vcmp.lt.s32.totalorder %v187_v41, 0  ;;  %v189_v43 = vsub.s32 0, %v187_v41  ;;  %v383_v12 = vadd.s32 3, %v212_v6  ;;  %v229_v17 = vand.u32 3, %v212_v6 }
  0xba   :  { %v190_v44 = vsel %vm188_vm10, %v189_v43, %v187_v41  ;;  %v384_v18 = vand.u32 3, %v383_v12  ;;  %vm230_vm14 = vcmp.lt.s32.totalorder %v229_v17, 2  ;;  %vm231_vm15 = vcmp.eq.s32.totalorder %v229_v17, 0  ;;  %547 = vmatpush.bf16.msra.mxu2 %v619_v0 }
  0xbb   :  { %v191_v46 = vclz %v190_v44  ;;  %vm234_vm0 = vcmp.eq.s32.totalorder %v229_v17, 2 }
  0xbc   :  { %vm385_vm1 = vcmp.lt.s32.totalorder %v384_v18, 2  ;;  %vm386_vm2 = vcmp.eq.s32.totalorder %v384_v18, 0  ;;  %vm389_vm3 = vcmp.eq.s32.totalorder %v384_v18, 2 }
  0xbd   :  { %v576_v47 = vadd.s32 4294967294, %v191_v46 }
  0xbe   :  { %548 = vmatpush.bf16.msra.mxu2 %v618_v35 }
  0xbf   :  { %vm577_vm11 = vcmp.lt.s32.totalorder %v576_v47, 0 }
  0xc0   :  { %v194_v23 = vsel %vm577_vm11, 0, %v576_v47 }
  0xc1   :  { %v195_v49 = vsub.s32 32, %v194_v23  ;;  %v199_v50 = vsub.s32 4294967266, %v194_v23  ;;  %v196_v51 = vshll.u32 %v187_v41, %v194_v23 }
  0xc2   :  { %549 = vmatpush.bf16.msra.mxu2 %v617_v36 }
  0xc3   :  { %v197_v52 = vshrl.u32 %v179_v48, %v195_v49  ;;  %v200_v53 = vadd.s32 127, %v199_v50 }
  0xc5   :  { %v198_v45 = vor.u32 %v197_v52, %v196_v51  ;;  %v201_v54 = vshll.u32 %v200_v53, 23 }
  0xc6   :  { %550 = vmatpush.bf16.msra.mxu2 %v616_v39 }
  0xc7   :  { %v202_v55 = vor.u32 4788187, %v201_v54  ;;  %v205_v57 = vcvt.s32.f32 %v198_v45 }
  0xc9   :  { %v203_v56 = vand.u32 2147483647, %v202_v55 }
  0xcb   :  { %v206_v58 = vmul.f32 %v205_v57, %v203_v56  ;;  %v642_v56 = vld [vmem:[%s895_s6] ss:$0 sm:$0xff] }
  0xcd   :  { %v207_v59 = vxor.u32 2147483648, %v206_v58 }
  0xcf   :  { %v208_v60 = vsel %vm87_vm12, %v207_v59, %v206_v58 }
  0xd0   :  { %v211_v62 = vsel %vm86_vm13, %v820_v8, %v208_v60  ;;  %v641_v8 = vld [vmem:[%s893_s4] ss:$0 sm:$0xff] }
  0xd1   :  { %v213_v63 = vmul.f32 %v211_v62, %v211_v62 }
  0xd3   :  { %v214_v1 = vmul.f32 -0.001358992, %v213_v63  ;;  %v221_v2 = vmul.f32 -0.00019511016, %v213_v63 }
  0xd5   :  { %v215_v4 = vadd.f32 0.041655596, %v214_v1  ;;  %v222_v5 = vadd.f32 0.008332121, %v221_v2 }
  0xd7   :  { %v216_v7 = vmul.f32 %v215_v4, %v213_v63  ;;  %v223_v9 = vmul.f32 %v222_v5, %v213_v63 }
  0xd9   :  { %v217_v10 = vadd.f32 -0.4999988, %v216_v7  ;;  %v224_v11 = vadd.f32 -0.16666654, %v223_v9 }
  0xdb   :  { %v218_v13 = vmul.f32 %v217_v10, %v213_v63  ;;  %v225_v14 = vmul.f32 %v224_v11, %v213_v63 }
  0xdd   :  { %v219_v15 = vadd.f32 1.0, %v218_v13  ;;  %v226_v16 = vadd.f32 1.0, %v225_v14 }
  0xdf   :  { %v227_v19 = vmul.f32 %v226_v16, %v211_v62  ;;  %v235_v20 = vxor.u32 2147483648, %v219_v15 }
  0xe1   :  { %v232_v22 = vxor.u32 2147483648, %v227_v19  ;;  %v391_v26 = vsel %vm389_vm3, %v235_v20, %v227_v19  ;;  %v236_v28 = vsel %vm234_vm0, %v235_v20, %v227_v19 }
  0xe3   :  { %v388_v25 = vsel %vm386_vm2, %v219_v15, %v232_v22  ;;  %v233_v27 = vsel %vm231_vm15, %v219_v15, %v232_v22 }
  0xe4   :  { %v392_v29 = vsel %vm385_vm1, %v388_v25, %v391_v26  ;;  %v237_v30 = vsel %vm230_vm14, %v233_v27, %v236_v28 }
  0xe5   :  { %v393_v31 = vsel %vm228_vm5, nan, %v392_v29  ;;  %v238_v32 = vsel %vm228_vm5, nan, %v237_v30 }
  0xe6   :  { %581 = vmatmul.msk.f32.vlgmr.msra.gmra.mxu0 %vm402_vm4, %v393_v31  ;;  %582 = vmatmul.msk.f32.vlgmr.msra.gmra.mxu1 %vm402_vm4, %v238_v32 }
 0x163   :  { %v423_v37 = vpop.f32.mrf.mxu0  ;;  %v446_v38 = vpop.f32.mrf.mxu1 }
 0x164   :  { %v447_v40 = vadd.f32 %v446_v38, %v423_v37 }
 0x166   :  { %v453_v42 = vadd.f32 %v641_v8, %v447_v40 }
 0x168   :  { %v583_v41 = vmul.f32 -1.442695, %v453_v42 }
 0x16a   :  { %643 = vpow2.f32 %v583_v41 }
 0x170   :  { %v644_v43 = vpop.eup %643 }
 0x171   :  { %v457_v44 = vadd.f32 1.0, %v644_v43 }
 0x173   :  { %645 = vrcp.f32 %v457_v44  ;;  %v469_v48 = vand.u32 2147483648, %v457_v44  ;;  %v467_v50 = vand.u32 2147483647, %v457_v44  ;;  %vm463_vm7 = vweird.f32 %v457_v44 }
 0x175   :  { %v470_v52 = vor.u32 1.1754944e-38, %v469_v48  ;;  %vm468_vm9 = vcmp.eq.f32.partialorder %v467_v50, 8.507059e+37 }
 0x179   :  { %v646_v46 = vpop.eup %645 }
 0x17a   :  { %v459_v47 = vmul.f32 %v646_v46, %v457_v44  ;;  %vm464_vm6 = vweird.f32 %v646_v46 }
 0x17b   :  { %vm465_vm8 = vmor %vm463_vm7, %vm464_vm6 }
 0x17c   :  { %v460_v23 = vsub.f32 1.0, %v459_v47 }
 0x17e   :  { %v461_v49 = vmul.f32 %v646_v46, %v460_v23 }
 0x180   :  { %v462_v51 = vadd.f32 %v646_v46, %v461_v49 }
 0x182   :  { %v466_v53 = vsel %vm465_vm8, %v646_v46, %v462_v51 }
 0x183   :  { %v471_v45 = vsel %vm468_vm9, %v470_v52, %v466_v53 }
 0x184   :  { %v473_v54 = vmul.f32 %v471_v45, %v453_v42 }
 0x186   :  { %v474_v55 = vpack.c.bf16 %v473_v54, %v473_v54 }
 0x188   :  { %551 = vmatmul.bf16.vlgmr.msra.gmra.mxu2 %v474_v55 }
 0x20b   :  { %v552_v57 = vpop.f32.mrf.mxu2 }
 0x20c   :  { %v553_v58 = vadd.f32 %v642_v56, %v552_v57 }
 0x20e   :  { %556 = vst [vmem:[#allocation8] sm:$0xff] %v553_v58 }
 0x20f   :  { %567 = dma.vmem_to_hbm [thread:$0]  %s563_s23, 128, %s565_s26, [#allocation4]  }
 0x213   :  { %v554_v59 = vpop.f32.mrf.mxu2 }
 0x214   :  { %747 = dma.done.wait [#allocation4], 128  }
 0x215   :  { %748 = vsyncadd [#allocation4], 4294967168 }
 0x216   :  { %572 = vsyncpa [#allocation3], 1 }
 0x217   :  { %573 = vsyncpa [#allocation6], 1 }
 0x218   :  { %574 = vsyncpa [#allocation4], 1 }

// kernel: tpu_custom_call.1
= control target key start
LH: loop header
LB: loop body
LE: loop exit
PB: predicated region body
PF: predicated region fallthrough
CT: control target
= control target key end

     0   :  { %12 = vsyncpa [#allocation3], 0  ;;  %s889_s0 = inlined_call_operand.vmem [shape: f32[8,1], index: 0, kind: input, shape index: {}]   ;;  %s890_s1 = inlined_call_operand.vmem [shape: f32[1,32], index: 1, kind: input, shape index: {}]   ;;  %s891_s2 = inlined_call_operand.hbm [shape: f32[32,128], index: 2, kind: input, shape index: {}]   ;;  %s892_s3 = inlined_call_operand.hbm [shape: f32[32,128], index: 3, kind: input, shape index: {}]   ;;  %s893_s4 = inlined_call_operand.vmem [shape: f32[1,128], index: 4, kind: input, shape index: {}]   ;;  %s894_s5 = inlined_call_operand.hbm [shape: bf16[128,128], index: 5, kind: input, shape index: {}]   ;;  %s895_s6 = inlined_call_operand.vmem [shape: f32[1,128], index: 6, kind: input, shape index: {}]   ;;  %s896_s7 = inlined_call_operand.hbm [shape: f32[8,128], index: 7, kind: output, shape index: {}]  }
   0x1   :  { %13 = vsyncpa [#allocation6], 0 }
   0x2   :  { %14 = vsyncpa [#allocation4], 0  ;;  %s36_s26 = sshll.u32 %s892_s3, 4  ;;  %s749_s27 = smov [#allocation5]   ;;  %s37_s26 = int_to_ptr.hbm [resolvable:$true] %s36_s26 }
   0x3   :  { %s38_s28 = sshll.u32 %s749_s27, 4  ;;  %s23_s8 = sshll.u32 %s891_s2, 4  ;;  %s39_s28 = int_to_ptr.vmem [resolvable:$true] %s38_s28  ;;  %s24_s8 = int_to_ptr.hbm [resolvable:$true] %s23_s8 }
   0x4   :  { %s750_s9 = smov 128   ;;  %s751_s10 = smov 8  }
   0x5   :  { %44 = dma.hbm_to_vmem [thread:$0]  %s37_s26, 512, %s39_s28, [#allocation6], %s750_s9, %s750_s9, %s751_s10  }
   0x6   :  { %s752_s11 = smov [#allocation2]   ;;  %s51_s15 = sshll.u32 %s894_s5, 4  ;;  %s52_s15 = int_to_ptr.hbm [resolvable:$true] %s51_s15 }
   0x7   :  { %s25_s12 = sshll.u32 %s752_s11, 4  ;;  %s753_s3 = smov [#allocation7]   ;;  %s26_s12 = int_to_ptr.vmem [resolvable:$true] %s25_s12 }
   0x8   :  { %31 = dma.hbm_to_vmem [thread:$0]  %s24_s8, 512, %s26_s12, [#allocation3], %s750_s9, %s750_s9, %s751_s10  }
   0x9   :  { %s53_s16 = sshll.u32 %s753_s3, 4  ;;  %s754_s17 = smov 64   ;;  %s54_s16 = int_to_ptr.vmem [resolvable:$true] %s53_s16 }
   0xa   :  { %s755_s18 = smov 4  }
   0xb   :  { %59 = dma.hbm_to_vmem [thread:$0]  %s52_s15, 1024, %s54_s16, [#allocation6], %s754_s17, %s754_s17, %s755_s18  }
   0xc   :  { %743 = dma.done.wait [#allocation3], 512  }
   0xd   :  { %744 = vsyncadd [#allocation3], 4294966784 }
   0xe   :  { %745 = dma.done.wait [#allocation6], 1536  }
   0xf   :  { %746 = vsyncadd [#allocation6], 4294965760  ;;  %v756_v0 = vmov 0   ;;  %v74_v1 = vld [vmem:[%s889_s0] sm:$0xff]  ;;  %v401_v3 = vld [vmem:[#allocation5 + $0x18] sm:$0xff]  ;;  %s763_s22 = smov [#allocation8]  }
  0x10   :  { %639 = vset.pattern.permute.xlu0 %v756_v0  ;;  %v640_v2 = vld [vmem:[%s890_s1] ss:$0 sm:$0xff]  ;;  %v397_v4 = vld [vmem:[#allocation2 + $0x18] sm:$0xff]  ;;  %v400_v5 = vld [vmem:[#allocation5 + $0x10] sm:$0xff]  ;;  %418 = vmatpush.msra.mxu0 %v401_v3  ;;  %v757_v24 = vmov 683565275  }
  0x11   :  { %78 = vperm.xlu0 %639, %v74_v1   ;;  %441 = vmatpush.msra.mxu1 %v397_v4  ;;  %v396_v7 = vld [vmem:[#allocation2 + $0x10] sm:$0xff]  ;;  %v399_v9 = vld [vmem:[#allocation5 + $0x8] sm:$0xff]  ;;  %v398_v12 = vld [vmem:[#allocation5] sm:$0xff]  ;;  %v758_v26 = vmov 2475754826   ;;  %s562_s23 = sshll.u32 %s763_s22, 4  ;;  %s563_s23 = int_to_ptr.vmem [resolvable:$true] %s562_s23 }
  0x12   :  { %v395_v10 = vld [vmem:[#allocation2 + $0x8] sm:$0xff]  ;;  %419 = vmatpush.msra.mxu0 %v400_v5  ;;  %v394_v13 = vld [vmem:[#allocation2] sm:$0xff]  ;;  %v759_v29 = vmov 2131351028   ;;  %v760_v32 = vmov 2102212464  }
  0x13   :  { %442 = vmatpush.msra.mxu1 %v396_v7  ;;  %v761_v35 = vmov 920167782   ;;  %v762_v38 = vmov 1326507024   ;;  %s564_s26 = sshll.u32 %s896_s7, 4  ;;  %s565_s26 = int_to_ptr.hbm [resolvable:$true] %s564_s26 }
  0x14   :  { %420 = vmatpush.msra.mxu0 %v399_v9 }
  0x15   :  { %443 = vmatpush.msra.mxu1 %v395_v10 }
  0x16   :  { %421 = vmatpush.msra.mxu0 %v398_v12 }
  0x17   :  { %444 = vmatpush.msra.mxu1 %v394_v13 }
  0x83   :  { %v79_v6 = vpop.permute.xlu0 %78 }
  0x84   :  { %v820_v8 = vmul.f32 %v640_v2, %v79_v6 }
  0x86   :  { %v88_v11 = vand.u32 2139095040, %v820_v8  ;;  %v85_v16 = vand.u32 2147483647, %v820_v8  ;;  %vm87_vm12 = vcmp.lt.s32.totalorder %v820_v8, 0 }
  0x88   :  { %v89_v14 = vshrl.u32 %v88_v11, 23  ;;  %v92_v18 = vand.u32 8388607, %v85_v16  ;;  %vm86_vm13 = vcmp.le.f32.partialorder %v85_v16, 0.7853982 }
  0x8a   :  { %v575_v15 = vadd.s32 4294967169, %v89_v14  ;;  %v93_v22 = vor.u32 8388608, %v92_v18 }
  0x8c   :  { %v95_v17 = vadd.s32 1, %v575_v15  ;;  %v837_v45 = vshll.u32 %v93_v22, 8 }
  0x8e   :  { %vm96_vm0 = vcmp.gt.s32.totalorder %v95_v17, 0  ;;  %v134_v54 = vand.u32 65535, %v837_v45  ;;  %v135_v59 = vshrl.u32 %v837_v45, 16 }
  0x8f   :  { %v97_v19 = vsel %vm96_vm0, %v95_v17, 0 }
  0x90   :  { %v99_v20 = vand.u32 31, %v97_v19  ;;  %v828_v23 = vshrl.u32 %v97_v19, 5 }
  0x92   :  { %v826_v21 = vsub.s32 32, %v99_v20  ;;  %v102_v25 = vshll.u32 %v757_v24, %v99_v20  ;;  %v105_v27 = vshll.u32 %v758_v26, %v99_v20  ;;  %v108_v31 = vshll.u32 %v759_v29, %v99_v20 }
  0x93   :  { %v111_v34 = vshll.u32 %v760_v32, %v99_v20  ;;  %v114_v37 = vshll.u32 %v761_v35, %v99_v20  ;;  %vm117_vm1 = vcmp.lt.s32.totalorder %v828_v23, 1  ;;  %vm120_vm2 = vcmp.lt.s32.totalorder %v828_v23, 4 }
  0x94   :  { %v103_v28 = vshrl.u32 %v758_v26, %v826_v21  ;;  %v106_v30 = vshrl.u32 %v759_v29, %v826_v21  ;;  %v109_v33 = vshrl.u32 %v760_v32, %v826_v21  ;;  %v112_v36 = vshrl.u32 %v761_v35, %v826_v21 }
  0x95   :  { %v115_v39 = vshrl.u32 %v762_v38, %v826_v21  ;;  %vm119_vm3 = vcmp.lt.s32.totalorder %v828_v23, 3  ;;  %vm118_vm4 = vcmp.lt.s32.totalorder %v828_v23, 2  ;;  %v101_v18 = vshrl.u32 %v757_v24, %v826_v21 }
  0x96   :  { %v104_v40 = vor.u32 %v103_v28, %v102_v25  ;;  %v107_v41 = vor.u32 %v106_v30, %v105_v27  ;;  %v110_v42 = vor.u32 %v109_v33, %v108_v31  ;;  %v113_v43 = vor.u32 %v112_v36, %v111_v34 }
  0x97   :  { %v116_v44 = vor.u32 %v115_v39, %v114_v37 }
  0x98   :  { %v125_v46 = vsel %vm117_vm1, %v104_v40, %v107_v41  ;;  %v129_v47 = vsel %vm117_vm1, %v107_v41, %v110_v42  ;;  %v126_v48 = vsel %vm120_vm2, %v113_v43, 920167782  ;;  %v122_v12 = vsel %vm120_vm2, %v110_v42, 2102212464 }
  0x99   :  { %v130_v49 = vsel %vm120_vm2, %v116_v44, 1326507024  ;;  %v127_v50 = vsel %vm119_vm3, %v110_v42, %v126_v48  ;;  %v121_v28 = vsel %vm117_vm1, %v101_v18, %v104_v40  ;;  %v123_v29 = vsel %vm119_vm3, %v107_v41, %v122_v12 }
  0x9a   :  { %v131_v51 = vsel %vm119_vm3, %v113_v43, %v130_v49  ;;  %v128_v52 = vsel %vm118_vm4, %v125_v46, %v127_v50  ;;  %v124_v21 = vsel %vm118_vm4, %v121_v28, %v123_v29 }
  0x9b   :  { %v132_v53 = vsel %vm118_vm4, %v129_v47, %v131_v51  ;;  %v158_v57 = vand.u32 65535, %v128_v52  ;;  %v159_v58 = vshrl.u32 %v128_v52, 16  ;;  %v178_v36 = vmul.u32 %v837_v45, %v124_v21  ;;  %v622_v21 = vld [vmem:[#allocation7 + $0x30] sm:$0xff] }
  0x9c   :  { %v136_v55 = vand.u32 65535, %v132_v53  ;;  %v137_v56 = vshrl.u32 %v132_v53, 16  ;;  %vm402_vm4 = vcmask 261120  }
  0x9d   :  { %v161_v61 = vmul.u32 %v159_v58, %v134_v54  ;;  %v162_v63 = vmul.u32 %v158_v57, %v135_v59  ;;  %v160_v3 = vmul.u32 %v158_v57, %v134_v54  ;;  %v163_v6 = vmul.u32 %v159_v58, %v135_v59 }
  0x9e   :  { %v139_v60 = vmul.u32 %v137_v56, %v134_v54  ;;  %v140_v62 = vmul.u32 %v136_v55, %v135_v59  ;;  %v138_v1 = vmul.u32 %v136_v55, %v134_v54  ;;  %v141_v5 = vmul.u32 %v137_v56, %v135_v59 }
  0x9f   :  { %v164_v4 = vshll.u32 %v161_v61, 16  ;;  %v166_v9 = vshll.u32 %v162_v63, 16  ;;  %v165_v26 = vshrl.u32 %v161_v61, 16  ;;  %v167_v32 = vshrl.u32 %v162_v63, 16 }
  0xa0   :  { %v142_v2 = vshll.u32 %v139_v60, 16  ;;  %v144_v7 = vshll.u32 %v140_v62, 16  ;;  %v143_v22 = vshrl.u32 %v139_v60, 16  ;;  %v145_v30 = vshrl.u32 %v140_v62, 16 }
  0xa1   :  { %vm168_vm6 = vc.u32 %v160_v3, %v164_v4  ;;  %v170_v11 = vadd.s32 %v164_v4, %v160_v3 }
  0xa2   :  { %vm146_vm5 = vc.u32 %v138_v1, %v142_v2  ;;  %v148_v10 = vadd.s32 %v142_v2, %v138_v1  ;;  %v169_v14 = vsel %vm168_vm6, 1, %v756_v0 }
  0xa3   :  { %v147_v13 = vsel %vm146_vm5, 1, %v756_v0  ;;  %v171_v17 = vadd.s32 %v169_v14, %v163_v6  ;;  %vm172_vm8 = vc.u32 %v170_v11, %v166_v9  ;;  %v174_v34 = vadd.s32 %v170_v11, %v166_v9 }
  0xa4   :  { %v149_v15 = vadd.s32 %v147_v13, %v141_v5  ;;  %vm150_vm7 = vc.u32 %v148_v10, %v144_v7  ;;  %v173_v20 = vsel %vm172_vm8, 1, %v756_v0  ;;  %vm228_vm5 = vweird.f32 %v820_v8 }
  0xa5   :  { %v151_v19 = vsel %vm150_vm7, 1, %v756_v0  ;;  %v175_v27 = vadd.s32 %v173_v20, %v171_v17 }
  0xa6   :  { %v153_v25 = vadd.s32 %v151_v19, %v149_v15 }
  0xa7   :  { %v176_v33 = vadd.s32 %v175_v27, %v165_v26 }
  0xa8   :  { %v154_v31 = vadd.s32 %v153_v25, %v143_v22 }
  0xa9   :  { %v177_v0 = vadd.s32 %v176_v33, %v167_v32  ;;  %v623_v33 = vld [vmem:[#allocation7 + $0x38] sm:$0xff] }
  0xaa   :  { %v155_v24 = vadd.s32 %v154_v31, %v145_v30  ;;  %543 = vmatpush.bf16.msra.mxu2 %v623_v33 }
  0xab   :  { %v181_v35 = vadd.s32 1, %v177_v0 }
  0xac   :  { %vm180_vm9 = vc.u32 %v155_v24, %v174_v34  ;;  %v179_v48 = vadd.s32 %v174_v34, %v155_v24  ;;  %v621_v24 = vld [vmem:[#allocation7 + $0x28] sm:$0xff]  ;;  %v620_v34 = vld [vmem:[#allocation7 + $0x20] sm:$0xff] }
  0xad   :  { %v182_v37 = vsel %vm180_vm9, %v181_v35, %v177_v0  ;;  %v619_v0 = vld [vmem:[#allocation7 + $0x18] sm:$0xff]  ;;  %v618_v35 = vld [vmem:[#allocation7 + $0x10] sm:$0xff] }
  0xae   :  { %v183_v38 = vadd.s32 %v182_v37, %v178_v36  ;;  %544 = vmatpush.bf16.msra.mxu2 %v622_v21  ;;  %v617_v36 = vld [vmem:[#allocation7 + $0x8] sm:$0xff] }
  0xb0   :  { %v184_v39 = vadd.s32 536870912, %v183_v38 }
  0xb2   :  { %v185_v40 = vshrl.u32 %v184_v39, 30  ;;  %545 = vmatpush.bf16.msra.mxu2 %v621_v24  ;;  %v616_v39 = vld [vmem:[#allocation7] sm:$0xff] }
  0xb4   :  { %v186_v42 = vshll.u32 %v185_v40, 30  ;;  %v209_v61 = vsub.s32 4, %v185_v40 }
  0xb6   :  { %v187_v41 = vsub.s32 %v183_v38, %v186_v42  ;;  %v210_v3 = vsel %vm87_vm12, %v209_v61, %v185_v40  ;;  %546 = vmatpush.bf16.msra.mxu2 %v620_v34 }
  0xb7   :  { %v212_v6 = vsel %vm86_vm13, 0, %v210_v3 }
  0xb8   :  { %vm188_vm10 = vcmp.lt.s32.totalorder %v187_v41, 0  ;;  %v189_v43 = vsub.s32 0, %v187_v41  ;;  %v383_v12 = vadd.s32 3, %v212_v6  ;;  %v229_v17 = vand.u32 3, %v212_v6 }
  0xba   :  { %v190_v44 = vsel %vm188_vm10, %v189_v43, %v187_v41  ;;  %v384_v18 = vand.u32 3, %v383_v12  ;;  %vm230_vm14 = vcmp.lt.s32.totalorder %v229_v17, 2  ;;  %vm231_vm15 = vcmp.eq.s32.totalorder %v229_v17, 0  ;;  %547 = vmatpush.bf16.msra.mxu2 %v619_v0 }
  0xbb   :  { %v191_v46 = vclz %v190_v44  ;;  %vm234_vm0 = vcmp.eq.s32.totalorder %v229_v17, 2 }
  0xbc   :  { %vm385_vm1 = vcmp.lt.s32.totalorder %v384_v18, 2  ;;  %vm386_vm2 = vcmp.eq.s32.totalorder %v384_v18, 0  ;;  %vm389_vm3 = vcmp.eq.s32.totalorder %v384_v18, 2 }
  0xbd   :  { %v576_v47 = vadd.s32 4294967294, %v191_v46 }
  0xbe   :  { %548 = vmatpush.bf16.msra.mxu2 %v618_v35 }
  0xbf   :  { %vm577_vm11 = vcmp.lt.s32.totalorder %v576_v47, 0 }
  0xc0   :  { %v194_v23 = vsel %vm577_vm11, 0, %v576_v47 }
  0xc1   :  { %v195_v49 = vsub.s32 32, %v194_v23  ;;  %v199_v50 = vsub.s32 4294967266, %v194_v23  ;;  %v196_v51 = vshll.u32 %v187_v41, %v194_v23 }
  0xc2   :  { %549 = vmatpush.bf16.msra.mxu2 %v617_v36 }
  0xc3   :  { %v197_v52 = vshrl.u32 %v179_v48, %v195_v49  ;;  %v200_v53 = vadd.s32 127, %v199_v50 }
  0xc5   :  { %v198_v45 = vor.u32 %v197_v52, %v196_v51  ;;  %v201_v54 = vshll.u32 %v200_v53, 23 }
  0xc6   :  { %550 = vmatpush.bf16.msra.mxu2 %v616_v39 }
  0xc7   :  { %v202_v55 = vor.u32 4788187, %v201_v54  ;;  %v205_v57 = vcvt.s32.f32 %v198_v45 }
  0xc9   :  { %v203_v56 = vand.u32 2147483647, %v202_v55 }
  0xcb   :  { %v206_v58 = vmul.f32 %v205_v57, %v203_v56  ;;  %v642_v56 = vld [vmem:[%s895_s6] ss:$0 sm:$0xff] }
  0xcd   :  { %v207_v59 = vxor.u32 2147483648, %v206_v58 }
  0xcf   :  { %v208_v60 = vsel %vm87_vm12, %v207_v59, %v206_v58 }
  0xd0   :  { %v211_v62 = vsel %vm86_vm13, %v820_v8, %v208_v60  ;;  %v641_v8 = vld [vmem:[%s893_s4] ss:$0 sm:$0xff] }
  0xd1   :  { %v213_v63 = vmul.f32 %v211_v62, %v211_v62 }
  0xd3   :  { %v214_v1 = vmul.f32 -0.001358992, %v213_v63  ;;  %v221_v2 = vmul.f32 -0.00019511016, %v213_v63 }
  0xd5   :  { %v215_v4 = vadd.f32 0.041655596, %v214_v1  ;;  %v222_v5 = vadd.f32 0.008332121, %v221_v2 }
  0xd7   :  { %v216_v7 = vmul.f32 %v215_v4, %v213_v63  ;;  %v223_v9 = vmul.f32 %v222_v5, %v213_v63 }
  0xd9   :  { %v217_v10 = vadd.f32 -0.4999988, %v216_v7  ;;  %v224_v11 = vadd.f32 -0.16666654, %v223_v9 }
  0xdb   :  { %v218_v13 = vmul.f32 %v217_v10, %v213_v63  ;;  %v225_v14 = vmul.f32 %v224_v11, %v213_v63 }
  0xdd   :  { %v219_v15 = vadd.f32 1.0, %v218_v13  ;;  %v226_v16 = vadd.f32 1.0, %v225_v14 }
  0xdf   :  { %v227_v19 = vmul.f32 %v226_v16, %v211_v62  ;;  %v235_v20 = vxor.u32 2147483648, %v219_v15 }
  0xe1   :  { %v232_v22 = vxor.u32 2147483648, %v227_v19  ;;  %v391_v26 = vsel %vm389_vm3, %v235_v20, %v227_v19  ;;  %v236_v28 = vsel %vm234_vm0, %v235_v20, %v227_v19 }
  0xe3   :  { %v388_v25 = vsel %vm386_vm2, %v219_v15, %v232_v22  ;;  %v233_v27 = vsel %vm231_vm15, %v219_v15, %v232_v22 }
  0xe4   :  { %v392_v29 = vsel %vm385_vm1, %v388_v25, %v391_v26  ;;  %v237_v30 = vsel %vm230_vm14, %v233_v27, %v236_v28 }
  0xe5   :  { %v393_v31 = vsel %vm228_vm5, nan, %v392_v29  ;;  %v238_v32 = vsel %vm228_vm5, nan, %v237_v30 }
  0xe6   :  { %581 = vmatmul.msk.f32.vlgmr.msra.gmra.mxu0 %vm402_vm4, %v393_v31  ;;  %582 = vmatmul.msk.f32.vlgmr.msra.gmra.mxu1 %vm402_vm4, %v238_v32 }
 0x163   :  { %v423_v37 = vpop.f32.mrf.mxu0  ;;  %v446_v38 = vpop.f32.mrf.mxu1 }
 0x164   :  { %v447_v40 = vadd.f32 %v446_v38, %v423_v37 }
 0x166   :  { %v453_v42 = vadd.f32 %v641_v8, %v447_v40 }
 0x168   :  { %v583_v41 = vmul.f32 -1.442695, %v453_v42 }
 0x16a   :  { %643 = vpow2.f32 %v583_v41 }
 0x170   :  { %v644_v43 = vpop.eup %643 }
 0x171   :  { %v457_v44 = vadd.f32 1.0, %v644_v43 }
 0x173   :  { %645 = vrcp.f32 %v457_v44  ;;  %v469_v48 = vand.u32 2147483648, %v457_v44  ;;  %v467_v50 = vand.u32 2147483647, %v457_v44  ;;  %vm463_vm7 = vweird.f32 %v457_v44 }
 0x175   :  { %v470_v52 = vor.u32 1.1754944e-38, %v469_v48  ;;  %vm468_vm9 = vcmp.eq.f32.partialorder %v467_v50, 8.507059e+37 }
 0x179   :  { %v646_v46 = vpop.eup %645 }
 0x17a   :  { %v459_v47 = vmul.f32 %v646_v46, %v457_v44  ;;  %vm464_vm6 = vweird.f32 %v646_v46 }
 0x17b   :  { %vm465_vm8 = vmor %vm463_vm7, %vm464_vm6 }
 0x17c   :  { %v460_v23 = vsub.f32 1.0, %v459_v47 }
 0x17e   :  { %v461_v49 = vmul.f32 %v646_v46, %v460_v23 }
 0x180   :  { %v462_v51 = vadd.f32 %v646_v46, %v461_v49 }
 0x182   :  { %v466_v53 = vsel %vm465_vm8, %v646_v46, %v462_v51 }
 0x183   :  { %v471_v45 = vsel %vm468_vm9, %v470_v52, %v466_v53 }
 0x184   :  { %v473_v54 = vmul.f32 %v471_v45, %v453_v42 }
 0x186   :  { %v474_v55 = vpack.c.bf16 %v473_v54, %v473_v54 }
 0x188   :  { %551 = vmatmul.bf16.vlgmr.msra.gmra.mxu2 %v474_v55 }
 0x20b   :  { %v552_v57 = vpop.f32.mrf.mxu2 }
 0x20c   :  { %v553_v58 = vadd.f32 %v642_v56, %v552_v57 }
 0x20e   :  { %556 = vst [vmem:[#allocation8] sm:$0xff] %v553_v58 }
 0x20f   :  { %567 = dma.vmem_to_hbm [thread:$0]  %s563_s23, 128, %s565_s26, [#allocation4]  }
 0x213   :  { %v554_v59 = vpop.f32.mrf.mxu2 }
 0x214   :  { %747 = dma.done.wait [#allocation4], 128  }
 0x215   :  { %748 = vsyncadd [#allocation4], 4294967168 }
 0x216   :  { %572 = vsyncpa [#allocation3], 1 }
 0x217   :  { %573 = vsyncpa [#allocation6], 1 }
 0x218   :  { %574 = vsyncpa [#allocation4], 1 }

</bundles_post_ra>
